<compile_context>
chip_gen: v6e
topology: v6e:2x2x1
jax: 0.10.0
libtpu: 0.0.40
codegen_flags: <defaults>
</compile_context>

<pallas_src>
import functools

import jax
import jax.numpy as jnp
from jax.experimental import pallas as pl
from jax.experimental.pallas import tpu as pltpu


def _round_up(x, m):
    return ((x + m - 1) // m) * m


def _project(x, w, b_ref, o_ref):
    """y[:, o] = sum_h x[:, h] * w[o, h] + b[o]   (VPU mul + XLU lane reduce).

    x : f32[TB, H]   w : f32[OUT, H]   b_ref : SMEM f32[OUT]   o_ref : f32[TB, OUT]
    """
    out = o_ref.shape[-1]
    cols = []
    for o in range(out):  # OUT == 2: fully unrolled, static
        col = jnp.sum(x * w[o:o + 1, :], axis=-1, keepdims=True) + b_ref[o]
        cols.append(col)
    o_ref[...] = jnp.concatenate(cols, axis=-1)


def _head_eval_kernel(x_ref, w_ref, b_ref, o_ref):
    _project(x_ref[...], w_ref[...], b_ref, o_ref)


def _head_train_kernel(x_ref, w_ref, bits_ref, b_ref, o_ref, *, thr, inv_keep):
    # Dropout: keep element iff bits >= thr  (P(keep) = 1 - p);
    # fold the 1/(1-p) survivor scale into a single select.
    keep = bits_ref[...] >= jnp.uint32(thr)
    x = x_ref[...] * jnp.where(keep, jnp.float32(inv_keep), jnp.float32(0.0))
    _project(x, w_ref[...], b_ref, o_ref)


def coconut_head(cls_feature, weight, bias, dropout_bits=None, *,
                 drop_rate=0.1, training=False):
    """Dropout(p) + Linear(H -> OUT) head.

    cls_feature : f32[B, H]
    weight      : f32[OUT, H]   (PyTorch nn.Linear layout)
    bias        : f32[OUT]
    dropout_bits: uint32[B, H]  (required iff training and drop_rate > 0)
    """
    B, H = cls_feature.shape
    OUT, H2 = weight.shape
    assert H == H2 and bias.shape == (OUT,)

    use_dropout = training and drop_rate > 0.0
    if use_dropout and dropout_bits is None:
        raise ValueError("dropout_bits (uint32[B, H]) required when training")

    # Batch tile: multiple of 8 (f32 sublane tile), capped so 2x double-buffered
    # activation tiles stay far under the v7x 64 MiB / 32 MiB-scoped VMEM budget.
    TB = min(512, _round_up(max(B, 1), 8))
    Bp = _round_up(B, TB)
    x = cls_feature if Bp == B else jnp.pad(cls_feature, ((0, Bp - B), (0, 0)))

    operands = [x, weight]
    in_specs = [
        pl.BlockSpec((TB, H), lambda i: (i, 0)),      # activations: tiled over batch
        pl.BlockSpec((OUT, H), lambda i: (0, 0)),     # weight: VMEM-resident
    ]
    if use_dropout:
        bits = dropout_bits if Bp == B else jnp.pad(dropout_bits,
                                                    ((0, Bp - B), (0, 0)))
        operands.append(bits)
        in_specs.append(pl.BlockSpec((TB, H), lambda i: (i, 0)))
    operands.append(bias)
    in_specs.append(pl.BlockSpec(memory_space=pltpu.MemorySpace.SMEM))  # 2 scalars

    if use_dropout:
        thr = min(int(round(drop_rate * (1 << 32))), (1 << 32) - 1)
        inv_keep = 1.0 / (1.0 - drop_rate)
        kernel = functools.partial(_head_train_kernel, thr=thr, inv_keep=inv_keep)
    else:
        kernel = _head_eval_kernel

    out = pl.pallas_call(
        kernel,
        out_shape=jax.ShapeDtypeStruct((Bp, OUT), jnp.float32),
        grid=(Bp // TB,),
        in_specs=in_specs,
        out_specs=pl.BlockSpec((TB, OUT), lambda i: (i, 0)),
        compiler_params=pltpu.CompilerParams(
            dimension_semantics=("parallel",),   # shard batch tiles across TCs (v7x)
        ),
    )(*operands)

    return out[:B] if Bp != B else out


def make_params(key, input_size=768, out_size=2):
    """Mirror CoconutModel.create_params(): Linear(768, 2), xavier_normal_ weight,
    default PyTorch uniform bias init.  Weight kept in PyTorch [OUT, H] layout."""
    kw, kb = jax.random.split(key)
    std = (2.0 / (input_size + out_size)) ** 0.5          # xavier_normal_
    weight = std * jax.random.normal(kw, (out_size, input_size), dtype=jnp.float32)
    bound = 1.0 / (input_size ** 0.5)
    bias = jax.random.uniform(kb, (out_size,), minval=-bound, maxval=bound,
                              dtype=jnp.float32)
    return weight, bias


if __name__ == "__main__":
    # batch=8 sentences, hidden=768 (BERT-base pooled feature), 2 output classes.
    B, H, OUT = 8, 768, 2

    key = jax.random.PRNGKey(0)
    k_feat, k_param, k_drop = jax.random.split(key, 3)

    # Synthetic pooled [CLS] feature (stands in for BertModel(...)[1]).
    cls_feature = jax.random.normal(k_feat, (B, H), dtype=jnp.float32)
    weight, bias = make_params(k_param, input_size=H, out_size=OUT)

    # ---- Inference path (dropout is identity in eval mode) ----
    out_eval = jax.block_until_ready(
        coconut_head(cls_feature, weight, bias, training=False))
    ref_eval = cls_feature @ weight.T + bias[None, :]
    assert out_eval.shape == (B, OUT)
    assert jnp.allclose(out_eval, ref_eval, atol=1e-4, rtol=1e-4), "eval mismatch"

    # ---- Training path (dropout active, exact parity vs reference mask) ----
    p = 0.1
    bits = jax.random.bits(k_drop, (B, H), dtype=jnp.uint32)
    out_train = jax.block_until_ready(
        coconut_head(cls_feature, weight, bias, dropout_bits=bits,
                     drop_rate=p, training=True))
    thr = jnp.uint32(min(int(round(p * (1 << 32))), (1 << 32) - 1))
    keep = (bits >= thr).astype(jnp.float32)
    ref_train = (cls_feature * keep * (1.0 / (1.0 - p))) @ weight.T + bias[None, :]
    assert out_train.shape == (B, OUT)
    assert jnp.all(jnp.isfinite(out_train))
    assert jnp.allclose(out_train, ref_train, atol=1e-4, rtol=1e-4), "train mismatch"

    print("KERNEL_OK")
</pallas_src>

<mosaic_0001>
module attributes {stable_mosaic.version = 11 : i64} {
  func.func @_head_eval_kernel(%arg0: i32, %arg1: memref<8x768xf32, #tpu.memory_space<vmem>>, %arg2: memref<2x768xf32, #tpu.memory_space<vmem>>, %arg3: memref<2xf32, #tpu.memory_space<smem>>, %arg4: memref<8x2xf32, #tpu.memory_space<vmem>>) attributes {dimension_semantics = [#tpu.dimension_semantics<parallel>], iteration_bounds = array<i64: 1>, scalar_prefetch = 0 : i64, scratch_operands = 0 : i64, tpu.core_type = #tpu.core_type<tc>, window_params = [{transform_indices = @transform_0, window_bounds = array<i64: 8, 768>}, {pipeline_mode = #tpu.pipeline_mode<synchronous>, transform_indices = @transform_1, window_bounds = array<i64: 2, 768>}, {transform_indices = @transform_2, window_bounds = array<i64: 2>}, {transform_indices = @transform_3, window_bounds = array<i64: 8, 2>}]} {
    %c0 = arith.constant 0 : index
    %c0_0 = arith.constant 0 : index
    %0 = vector.load %arg1[%c0, %c0_0] : memref<8x768xf32, #tpu.memory_space<vmem>>, vector<8x768xf32>
    %c0_1 = arith.constant 0 : index
    %c0_2 = arith.constant 0 : index
    %1 = vector.load %arg2[%c0_1, %c0_2] : memref<2x768xf32, #tpu.memory_space<vmem>>, vector<2x768xf32>
    %2 = vector.extract_strided_slice %1 {offsets = [0, 0], sizes = [1, 768], strides = [1, 1]} : vector<2x768xf32> to vector<1x768xf32>
    %3 = vector.broadcast %2 : vector<1x768xf32> to vector<8x768xf32>
    %4 = arith.mulf %0, %3 : vector<8x768xf32>
    %cst = arith.constant dense<0.000000e+00> : vector<8xf32>
    %5 = vector.multi_reduction <add>, %4, %cst [1] : vector<8x768xf32> to vector<8xf32>
    %6 = vector.shape_cast %5 : vector<8xf32> to vector<8x1xf32>
    %c0_3 = arith.constant 0 : index
    %7 = memref.load %arg3[%c0_3] : memref<2xf32, #tpu.memory_space<smem>>
    %8 = vector.broadcast %7 : f32 to vector<8x1xf32>
    %9 = arith.addf %6, %8 : vector<8x1xf32>
    %10 = vector.extract_strided_slice %1 {offsets = [1, 0], sizes = [1, 768], strides = [1, 1]} : vector<2x768xf32> to vector<1x768xf32>
    %11 = vector.broadcast %10 : vector<1x768xf32> to vector<8x768xf32>
    %12 = arith.mulf %0, %11 : vector<8x768xf32>
    %cst_4 = arith.constant dense<0.000000e+00> : vector<8xf32>
    %13 = vector.multi_reduction <add>, %12, %cst_4 [1] : vector<8x768xf32> to vector<8xf32>
    %14 = vector.shape_cast %13 : vector<8xf32> to vector<8x1xf32>
    %c1 = arith.constant 1 : index
    %15 = memref.load %arg3[%c1] : memref<2xf32, #tpu.memory_space<smem>>
    %16 = vector.broadcast %15 : f32 to vector<8x1xf32>
    %17 = arith.addf %14, %16 : vector<8x1xf32>
    %18 = tpu.concatenate %9, %17 in 1 : vector<8x1xf32>, vector<8x1xf32> -> vector<8x2xf32>
    %c0_5 = arith.constant 0 : index
    %c0_6 = arith.constant 0 : index
    %19 = vector.load %arg4[%c0_5, %c0_6] : memref<8x2xf32, #tpu.memory_space<vmem>>, vector<8x2xf32>
    tpu.vector_store %arg4[%c0_5, %c0_6], %18 {strides = array<i32>} : memref<8x2xf32, #tpu.memory_space<vmem>>, vector<8x2xf32>,
    return
  }
  func.func @transform_0(%arg0: i32) -> (i32, i32) {
    %c0_i32 = arith.constant 0 : i32
    %c0_i32_0 = arith.constant 0 : i32
    return %arg0, %c0_i32 : i32, i32
  }
  func.func @transform_1(%arg0: i32) -> (i32, i32) {
    %c0_i32 = arith.constant 0 : i32
    %c0_i32_0 = arith.constant 0 : i32
    %c0_i32_1 = arith.constant 0 : i32
    return %c0_i32, %c0_i32_0 : i32, i32
  }
  func.func @transform_2(%arg0: i32) -> i32 {
    %c0_i32 = arith.constant 0 : i32
    %c0_i32_0 = arith.constant 0 : i32
    return %c0_i32 : i32
  }
  func.func @transform_3(%arg0: i32) -> (i32, i32) {
    %c0_i32 = arith.constant 0 : i32
    %c0_i32_0 = arith.constant 0 : i32
    return %arg0, %c0_i32 : i32, i32
  }
}

</mosaic_0001>

<bundles_post_ra>
// kernel: tpu_custom_call.1
= control target key start
LH: loop header
LB: loop body
LE: loop exit
PB: predicated region body
PF: predicated region fallthrough
CT: control target
= control target key end

     0   :  { %8 = vsyncpa [#allocation3], 0  ;;  %s309_s0 = inlined_call_operand.hbm [shape: f32[8,768], index: 0, kind: input, shape index: {}]   ;;  %s310_s1 = inlined_call_operand.hbm [shape: f32[2,768], index: 1, kind: input, shape index: {}]   ;;  %s311_s2 = inlined_call_operand.vmem [shape: f32[2], index: 2, kind: input, shape index: {}]   ;;  %s312_s3 = inlined_call_operand.vmem [shape: f32[8,2], index: 3, kind: output, shape index: {}]  }
   0x1   :  { %9 = vsyncpa [#allocation6], 0 }
   0x2   :  { %10 = vsyncpa [#allocation4], 0  ;;  %s274_s12 = smov [#allocation2]   ;;  %s275_s14 = smov [#allocation5]  }
   0x3   :  { %s17_s13 = sshll.u32 %s274_s12, 4  ;;  %s27_s15 = sshll.u32 %s275_s14, 4  ;;  %s18_s13 = int_to_ptr.vmem [resolvable:$true] %s17_s13  ;;  %s28_s15 = int_to_ptr.vmem [resolvable:$true] %s27_s15 }
   0x4   :  { %s224_s16 = scalar_lea.vmem %s18_s13, 768  ;;  %p229_p1 = scmp.lt.s32.totalorder %s18_s13, %s18_s13 }
   0x5   :  { %p225_p0 = scmp.ne.s32.totalorder %s18_s13, %s224_s16  ;;  %p230_p2 = scmp.lt.s32.totalorder %s224_s16, %s224_s16 }
   0x7   :  { %p231_p3 = por %p230_p2, %p229_p1 }
   0x9   :  { %p232_p4 = pnand %p231_p3, %p225_p0 }
   0xb   :  { %235 = shalt.err (!%p232_p4)
}
   0xc   :  { %20 = dma.hbm_to_vmem [thread:$0]  %s309_s0, 768, %s18_s13, [#allocation3]  }
   0xd   :  { %s244_s19 = scalar_lea.vmem %s28_s15, 192  ;;  %p249_p6 = scmp.lt.s32.totalorder %s28_s15, %s28_s15 }
   0xe   :  { %p245_p5 = scmp.ne.s32.totalorder %s28_s15, %s244_s19  ;;  %p250_p7 = scmp.lt.s32.totalorder %s244_s19, %s244_s19 }
  0x10   :  { %p251_p8 = por %p250_p7, %p249_p6 }
  0x12   :  { %p252_p9 = pnand %p251_p8, %p245_p5 }
  0x14   :  { %255 = shalt.err (!%p252_p9)
}
  0x15   :  { %30 = dma.hbm_to_vmem [thread:$0]  %s310_s1, 192, %s28_s15, [#allocation6]  }
  0x16   :  { %s37_s24 = sshll.u32 %s311_s2, 4  ;;  %s38_s24 = int_to_ptr.vmem [resolvable:$true] %s37_s24 }
  0x17   :  { %s256_s25 = scalar_lea.vmem %s38_s24, 16  ;;  %p261_p11 = scmp.lt.s32.totalorder %s38_s24, %s38_s24 }
  0x18   :  { %p257_p10 = scmp.ne.s32.totalorder %s38_s24, %s256_s25  ;;  %p262_p12 = scmp.lt.s32.totalorder %s256_s25, %s256_s25 }
  0x1a   :  { %p263_p13 = por %p262_p12, %p261_p11 }
  0x1c   :  { %p264_p0 = pnand %p263_p13, %p257_p10 }
  0x1e   :  { %267 = shalt.err (!%p264_p0)
}
  0x1f   :  { %s276_s0 = smov [#allocation7]  }
  0x20   :  { %40 = dma.vmem_to_smem %s38_s24, 16, %s276_s0, [#allocation4]  }
  0x21   :  { %268 = dma.done.wait [#allocation3], 768  }
  0x22   :  { %269 = vsyncadd [#allocation3], 4294966528 }
  0x23   :  { %270 = dma.done.wait [#allocation6], 192  }
  0x24   :  { %271 = vsyncadd [#allocation6], 4294967104 }
  0x25   :  { %272 = dma.done.wait [#allocation4], 16  }
  0x26   :  { %273 = vsyncadd [#allocation4], 4294967280 }
  0x27   :  { %50 = sfence }
  0x28   :  { %v61_v0 = vlaneseq  ;;  %v57_v2 = vld [vmem:[#allocation5] sm:$0xff]  ;;  %v58_v3 = vld [vmem:[#allocation5 + $0x8] sm:$0xf]  ;;  %v51_v16 = vld [vmem:[#allocation2] sm:$0xff]  ;;  %s128_s1 = sld [smem:[#allocation7]]  ;;  %vm201_vm0 = vcmask 7168  }
  0x29   :  { %v52_v17 = vld [vmem:[#allocation2 + $0x8] sm:$0xff]  ;;  %v53_v18 = vld [vmem:[#allocation2 + $0x10] sm:$0xff]  ;;  %v54_v23 = vld [vmem:[#allocation2 + $0x18] sm:$0xff]  ;;  %s212_s2 = sld [smem:[#allocation7 + $0x1]]  ;;  %vm203_vm1 = vcmask 15360  }
  0x2a   :  { %v62_v1 = vshrl.u32 %v61_v0, 7  ;;  %v55_v31 = vld [vmem:[#allocation2 + $0x20] sm:$0xff]  ;;  %v56_v39 = vld [vmem:[#allocation2 + $0x28] sm:$0xff] }
  0x2c   :  { %v63_v4 = vsub.s32 0, %v62_v1  ;;  %v67_v5 = vsub.s32 2, %v62_v1  ;;  %v71_v6 = vsub.s32 4, %v62_v1  ;;  %v75_v7 = vsub.s32 6, %v62_v1 }
  0x2d   :  { %v133_v8 = vsub.s32 1, %v62_v1  ;;  %v137_v9 = vsub.s32 3, %v62_v1  ;;  %v141_v10 = vsub.s32 5, %v62_v1  ;;  %v145_v11 = vsub.s32 7, %v62_v1 }
  0x2e   :  { %v64_v12 = vrot.slane %v57_v2, %v63_v4  ;;  %v68_v13 = vrot.slane %v57_v2, %v67_v5  ;;  %v72_v14 = vrot.slane %v57_v2, %v71_v6  ;;  %v76_v15 = vrot.slane %v57_v2, %v75_v7 }
  0x2f   :  { %v80_v19 = vrot.slane %v58_v3, %v63_v4  ;;  %v84_v20 = vrot.slane %v58_v3, %v67_v5  ;;  %v134_v21 = vrot.slane %v57_v2, %v133_v8  ;;  %v138_v22 = vrot.slane %v57_v2, %v137_v9 }
  0x30   :  { %v94_v24 = vrot.slane %v64_v12, %v63_v4  ;;  %v98_v25 = vrot.slane %v68_v13, %v63_v4  ;;  %v102_v26 = vrot.slane %v72_v14, %v63_v4  ;;  %v106_v27 = vrot.slane %v76_v15, %v63_v4 }
  0x31   :  { %v110_v28 = vrot.slane %v80_v19, %v63_v4  ;;  %v142_v29 = vrot.slane %v57_v2, %v141_v10  ;;  %v146_v30 = vrot.slane %v57_v2, %v145_v11  ;;  %v114_v35 = vrot.slane %v84_v20, %v63_v4 }
  0x32   :  { %v115_v32 = vmul.f32 %v94_v24, %v51_v16  ;;  %v116_v33 = vmul.f32 %v98_v25, %v52_v17  ;;  %v117_v34 = vmul.f32 %v102_v26, %v53_v18  ;;  %v118_v36 = vmul.f32 %v106_v27, %v54_v23 }
  0x33   :  { %v150_v37 = vrot.slane %v58_v3, %v133_v8  ;;  %v154_v38 = vrot.slane %v58_v3, %v137_v9  ;;  %v164_v41 = vrot.slane %v134_v21, %v133_v8  ;;  %v168_v42 = vrot.slane %v138_v22, %v133_v8 }
  0x34   :  { %v121_v40 = vadd.f32 %v116_v33, %v115_v32  ;;  %v172_v43 = vrot.slane %v142_v29, %v133_v8  ;;  %v119_v44 = vmul.f32 %v110_v28, %v55_v31  ;;  %v176_v45 = vrot.slane %v146_v30, %v133_v8 }
  0x35   :  { %v180_v46 = vrot.slane %v150_v37, %v133_v8  ;;  %v185_v48 = vmul.f32 %v164_v41, %v51_v16  ;;  %v186_v49 = vmul.f32 %v168_v42, %v52_v17  ;;  %v120_v51 = vmul.f32 %v114_v35, %v56_v39 }
  0x36   :  { %v122_v47 = vadd.f32 %v121_v40, %v117_v34  ;;  %v187_v50 = vmul.f32 %v172_v43, %v53_v18  ;;  %v184_v53 = vrot.slane %v154_v38, %v133_v8  ;;  %v188_v54 = vmul.f32 %v176_v45, %v54_v23 }
  0x37   :  { %v191_v55 = vadd.f32 %v186_v49, %v185_v48  ;;  %v189_v57 = vmul.f32 %v180_v46, %v55_v31  ;;  %v129_v1 = vstv %s128_s1  ;;  %v199_v2 = vstv %s212_s2 }
  0x38   :  { %v123_v52 = vadd.f32 %v122_v47, %v118_v36  ;;  %v190_v60 = vmul.f32 %v184_v53, %v56_v39 }
  0x39   :  { %v192_v58 = vadd.f32 %v191_v55, %v187_v50 }
  0x3a   :  { %v124_v56 = vadd.f32 %v123_v52, %v119_v44 }
  0x3b   :  { %v193_v61 = vadd.f32 %v192_v58, %v188_v54 }
  0x3c   :  { %v125_v59 = vadd.f32 %v124_v56, %v120_v51 }
  0x3d   :  { %v194_v62 = vadd.f32 %v193_v61, %v189_v57 }
  0x3e   :  { %126 = vadd.xlane.f32.xlu0 %v125_v59 }
  0x3f   :  { %v195_v63 = vadd.f32 %v194_v62, %v190_v60 }
  0x42   :  { %196 = vadd.xlane.f32.xlu0 %v195_v63 }
  0xc7   :  { %v127_v0 = vpop.xlane.xlu0 %126 }
  0xc8   :  { %v130_v4 = vadd.f32 %v129_v1, %v127_v0 }
  0xcb   :  { %v197_v3 = vpop.xlane.xlu0 %196 }
  0xcc   :  { %v200_v5 = vadd.f32 %v199_v2, %v197_v3 }
  0xce   :  { %v202_v6 = vsel %vm201_vm0, %v130_v4, %v200_v5 }
  0xcf   :  { %204 = vst.msk [vmem:[%s312_s3] sm:$0xff] %vm203_vm1, %v202_v6 }
  0xd0   :  { %209 = vsyncpa [#allocation3], 1 }
  0xd1   :  { %210 = vsyncpa [#allocation6], 1 }
  0xd2   :  { %211 = vsyncpa [#allocation4], 1 }

</bundles_post_ra>
